<compile_context>
chip_gen: v7x
topology: tpu7x:2x2x1
jax: 0.10.0
libtpu: 0.0.40
codegen_flags: <defaults>
</compile_context>

<pallas_src>
import jax
import jax.numpy as jnp
from jax.experimental import pallas as pl
from jax.experimental.pallas import tpu as pltpu


def _round_up(n, m):
    return ((n + m - 1) // m) * m


def actor_kernel(x_ref, w1_ref, b1_ref, w2_ref, b2_ref, out_ref):
    # x tile: [TB, S].  astype is a no-op if x is already bf16.
    x = x_ref[...].astype(jnp.bfloat16)
    # Hidden layer: bf16 MXU matmul (weights pre-cast), f32 accumulate,
    # f32 bias + ReLU on a lane-dense [TB, 128] slab.
    h = jnp.dot(x, w1_ref[...], preferred_element_type=jnp.float32) + b1_ref[...]
    h = jnp.maximum(h, 0.0)
    # Output layer: bf16 MXU matmul with K=128 contraction, f32 accumulate.
    logits = jnp.dot(h.astype(jnp.bfloat16), w2_ref[...],
                     preferred_element_type=jnp.float32) + b2_ref[...]
    # Numerically-stable softmax along the action (lane) axis, all f32.
    m = jnp.max(logits, axis=-1, keepdims=True)
    e = jnp.exp(logits - m)
    denom = jnp.sum(e, axis=-1, keepdims=True)
    # Exact reciprocal on the [TB,1] column (cheap) -> rows sum to ~1 exactly.
    out_ref[...] = (e * (1.0 / denom)).astype(out_ref.dtype)


def prepare_params(w1, b1, w2, b2):
    """One-time param prep: zero-pad hidden to a multiple of 128 and pre-cast
    weight matrices to bf16.  Call once; reuse across forward calls."""
    state_dim, hidden = w1.shape
    action_dim = w2.shape[1]
    hp = _round_up(hidden, 128)

    w1p = jnp.zeros((state_dim, hp), jnp.float32).at[:, :hidden].set(w1)
    b1p = jnp.zeros((1, hp), jnp.float32).at[:, :hidden].set(
        jnp.asarray(b1, jnp.float32).reshape(1, hidden))
    w2p = jnp.zeros((hp, action_dim), jnp.float32).at[:hidden, :].set(w2)
    b2p = jnp.asarray(b2, jnp.float32).reshape(1, action_dim)

    return (w1p.astype(jnp.bfloat16), b1p,
            w2p.astype(jnp.bfloat16), b2p)


def discrete_soft_actor_forward(x, w1_bf, b1, w2_bf, b2, *, block_batch=4096):
    """MLP policy-head forward over a 1-D batch grid of TB-row slabs.

    Expects params from prepare_params (bf16 weights, hidden padded to 128)."""
    batch, state_dim = x.shape
    hidden_p = w1_bf.shape[1]
    action_dim = w2_bf.shape[1]

    # Batch tile: multiple of 16 (bf16 sublanes).  When the batch allows,
    # pick TB so there are >= 2 grid steps (v7x megacore sharding).
    batch16 = _round_up(batch, 16)
    if batch16 >= 32:
        tb = min(block_batch, _round_up((batch16 + 1) // 2, 16))
    else:
        tb = batch16
    padded = _round_up(batch, tb)
    if padded != batch:
        x = jnp.pad(x, ((0, padded - batch), (0, 0)))

    out = pl.pallas_call(
        actor_kernel,
        out_shape=jax.ShapeDtypeStruct((padded, action_dim), jnp.float32),
        grid=(padded // tb,),
        in_specs=[
            pl.BlockSpec((tb, state_dim), lambda i: (i, 0)),          # x tile
            pl.BlockSpec((state_dim, hidden_p), lambda i: (0, 0)),    # w1 (resident, bf16)
            pl.BlockSpec((1, hidden_p), lambda i: (0, 0)),            # b1 (resident, f32)
            pl.BlockSpec((hidden_p, action_dim), lambda i: (0, 0)),   # w2 (resident, bf16)
            pl.BlockSpec((1, action_dim), lambda i: (0, 0)),          # b2 (resident, f32)
        ],
        out_specs=pl.BlockSpec((tb, action_dim), lambda i: (i, 0)),
        compiler_params=pltpu.CompilerParams(
            dimension_semantics=("parallel",)),
    )(x, w1_bf, b1, w2_bf, b2)
    return out[:batch]


def init_params(key, state_dim, action_dim, hidden):
    """Deterministic synthetic init (PyTorch-Linear-like uniform fan-in)."""
    k1, k2, k3, k4 = jax.random.split(key, 4)
    lim1 = 1.0 / jnp.sqrt(state_dim)
    lim2 = 1.0 / jnp.sqrt(hidden)
    w1 = jax.random.uniform(k1, (state_dim, hidden), jnp.float32, -lim1, lim1)
    b1 = jax.random.uniform(k2, (hidden,), jnp.float32, -lim1, lim1)
    w2 = jax.random.uniform(k3, (hidden, action_dim), jnp.float32, -lim2, lim2)
    b2 = jax.random.uniform(k4, (action_dim,), jnp.float32, -lim2, lim2)
    return w1, b1, w2, b2


def reference_forward(x, w1, b1, w2, b2):
    h = jnp.maximum(x @ w1 + b1, 0.0)
    logits = h @ w2 + b2
    return jax.nn.softmax(logits, axis=-1)


if __name__ == "__main__":
    state_dim, action_dim, hidden = 32, 8, 64

    key = jax.random.PRNGKey(0)
    k_x, k_p, k_x2 = jax.random.split(key, 3)
    w1, b1, w2, b2 = init_params(k_p, state_dim, action_dim, hidden)
    # One-time param prep (bf16 weights, hidden padded 64 -> 128).
    w1_bf, b1p, w2_bf, b2p = prepare_params(w1, b1, w2, b2)

    # Small batch (matches the module's typical single/low-batch use).
    batch = 2
    x = jax.random.normal(k_x, (batch, state_dim), dtype=jnp.float32)
    probs = discrete_soft_actor_forward(x, w1_bf, b1p, w2_bf, b2p)
    jax.block_until_ready(probs)

    ref = reference_forward(x, w1, b1, w2, b2)
    assert probs.shape == (batch, action_dim)
    # bf16 matmul operands -> loosened tolerance on probabilities.
    assert jnp.allclose(probs, ref, atol=1e-2, rtol=1e-2)
    # Exact reciprocal -> rows sum to 1 tightly.
    assert jnp.allclose(jnp.sum(probs, axis=-1), 1.0, atol=1e-5)

    # Second check: ragged batch producing a multi-step grid (padding,
    # pipelining, and the >=2-step megacore path).
    batch2 = 20
    x2 = jax.random.normal(k_x2, (batch2, state_dim), dtype=jnp.float32)
    probs2 = discrete_soft_actor_forward(x2, w1_bf, b1p, w2_bf, b2p)
    jax.block_until_ready(probs2)
    ref2 = reference_forward(x2, w1, b1, w2, b2)
    assert probs2.shape == (batch2, action_dim)
    assert jnp.allclose(probs2, ref2, atol=1e-2, rtol=1e-2)
    assert jnp.allclose(jnp.sum(probs2, axis=-1), 1.0, atol=1e-5)

    # Third check: bf16 input path (no wrapper-side cast, in-kernel astype is
    # a no-op), larger batch exercising the big default tile.
    batch3 = 4096
    x3 = jax.random.normal(k_x2, (batch3, state_dim), dtype=jnp.bfloat16)
    probs3 = discrete_soft_actor_forward(x3, w1_bf, b1p, w2_bf, b2p)
    jax.block_until_ready(probs3)
    ref3 = reference_forward(x3.astype(jnp.float32), w1, b1, w2, b2)
    assert probs3.shape == (batch3, action_dim)
    assert jnp.allclose(probs3, ref3, atol=2e-2, rtol=2e-2)
    assert jnp.allclose(jnp.sum(probs3, axis=-1), 1.0, atol=1e-5)

    print("KERNEL_OK")
</pallas_src>

<mosaic_0001>
module attributes {stable_mosaic.version = 11 : i64} {
  func.func @actor_kernel(%arg0: i32, %arg1: memref<16x32xf32, #tpu.memory_space<vmem>>, %arg2: memref<32x128xbf16, #tpu.memory_space<vmem>>, %arg3: memref<1x128xf32, #tpu.memory_space<vmem>>, %arg4: memref<128x8xbf16, #tpu.memory_space<vmem>>, %arg5: memref<1x8xf32, #tpu.memory_space<vmem>>, %arg6: memref<16x8xf32, #tpu.memory_space<vmem>>) attributes {dimension_semantics = [#tpu.dimension_semantics<parallel>], iteration_bounds = array<i64: 1>, scalar_prefetch = 0 : i64, scratch_operands = 0 : i64, tpu.core_type = #tpu.core_type<tc>, window_params = [{transform_indices = @transform_0, window_bounds = array<i64: 16, 32>}, {pipeline_mode = #tpu.pipeline_mode<synchronous>, transform_indices = @transform_1, window_bounds = array<i64: 32, 128>}, {pipeline_mode = #tpu.pipeline_mode<synchronous>, transform_indices = @transform_2, window_bounds = array<i64: 1, 128>}, {pipeline_mode = #tpu.pipeline_mode<synchronous>, transform_indices = @transform_3, window_bounds = array<i64: 128, 8>}, {pipeline_mode = #tpu.pipeline_mode<synchronous>, transform_indices = @transform_4, window_bounds = array<i64: 1, 8>}, {transform_indices = @transform_5, window_bounds = array<i64: 16, 8>}]} {
    %c0 = arith.constant 0 : index
    %c0_0 = arith.constant 0 : index
    %0 = vector.load %arg1[%c0, %c0_0] : memref<16x32xf32, #tpu.memory_space<vmem>>, vector<16x32xf32>
    %1 = arith.truncf %0 : vector<16x32xf32> to vector<16x32xbf16>
    %c0_1 = arith.constant 0 : index
    %c0_2 = arith.constant 0 : index
    %2 = vector.load %arg2[%c0_1, %c0_2] : memref<32x128xbf16, #tpu.memory_space<vmem>>, vector<32x128xbf16>
    %cst = arith.constant dense<0.000000e+00> : vector<16x128xf32>
    %3 = tpu.matmul %1, %2, %cst {dimension_numbers = #tpu.dot_dimension_numbers<[1], [0], [0], [1], [0, 0, 1, 1], [], []>} : vector<16x32xbf16>, vector<32x128xbf16>, vector<16x128xf32> -> vector<16x128xf32>
    %c0_3 = arith.constant 0 : index
    %c0_4 = arith.constant 0 : index
    %4 = vector.load %arg3[%c0_3, %c0_4] : memref<1x128xf32, #tpu.memory_space<vmem>>, vector<1x128xf32>
    %5 = vector.broadcast %4 : vector<1x128xf32> to vector<16x128xf32>
    %6 = arith.addf %3, %5 : vector<16x128xf32>
    %cst_5 = arith.constant 0.000000e+00 : f32
    %7 = vector.broadcast %cst_5 : f32 to vector<16x128xf32>
    %8 = arith.maximumf %6, %7 : vector<16x128xf32>
    %9 = arith.truncf %8 : vector<16x128xf32> to vector<16x128xbf16>
    %c0_6 = arith.constant 0 : index
    %c0_7 = arith.constant 0 : index
    %10 = vector.load %arg4[%c0_6, %c0_7] : memref<128x8xbf16, #tpu.memory_space<vmem>>, vector<128x8xbf16>
    %cst_8 = arith.constant dense<0.000000e+00> : vector<16x8xf32>
    %11 = tpu.matmul %9, %10, %cst_8 {dimension_numbers = #tpu.dot_dimension_numbers<[1], [0], [0], [1], [0, 0, 1, 1], [], []>} : vector<16x128xbf16>, vector<128x8xbf16>, vector<16x8xf32> -> vector<16x8xf32>
    %c0_9 = arith.constant 0 : index
    %c0_10 = arith.constant 0 : index
    %12 = vector.load %arg5[%c0_9, %c0_10] : memref<1x8xf32, #tpu.memory_space<vmem>>, vector<1x8xf32>
    %13 = vector.broadcast %12 : vector<1x8xf32> to vector<16x8xf32>
    %14 = arith.addf %11, %13 : vector<16x8xf32>
    %cst_11 = arith.constant dense<0xFF800000> : vector<16xf32>
    %15 = vector.multi_reduction <maximumf>, %14, %cst_11 [1] : vector<16x8xf32> to vector<16xf32>
    %16 = vector.shape_cast %15 : vector<16xf32> to vector<16x1xf32>
    %17 = vector.broadcast %16 : vector<16x1xf32> to vector<16x8xf32>
    %18 = arith.subf %14, %17 : vector<16x8xf32>
    %19 = math.exp %18 : vector<16x8xf32>
    %cst_12 = arith.constant dense<0.000000e+00> : vector<16xf32>
    %20 = vector.multi_reduction <add>, %19, %cst_12 [1] : vector<16x8xf32> to vector<16xf32>
    %21 = vector.shape_cast %20 : vector<16xf32> to vector<16x1xf32>
    %cst_13 = arith.constant 1.000000e+00 : f32
    %22 = vector.broadcast %cst_13 : f32 to vector<16x1xf32>
    %23 = arith.divf %22, %21 : vector<16x1xf32>
    %24 = vector.broadcast %23 : vector<16x1xf32> to vector<16x8xf32>
    %25 = arith.mulf %19, %24 : vector<16x8xf32>
    %c0_14 = arith.constant 0 : index
    %c0_15 = arith.constant 0 : index
    %26 = vector.load %arg6[%c0_14, %c0_15] : memref<16x8xf32, #tpu.memory_space<vmem>>, vector<16x8xf32>
    tpu.vector_store %arg6[%c0_14, %c0_15], %25 {strides = array<i32>} : memref<16x8xf32, #tpu.memory_space<vmem>>, vector<16x8xf32>,
    return
  }
  func.func @transform_0(%arg0: i32) -> (i32, i32) {
    %c0_i32 = arith.constant 0 : i32
    %c0_i32_0 = arith.constant 0 : i32
    return %arg0, %c0_i32 : i32, i32
  }
  func.func @transform_1(%arg0: i32) -> (i32, i32) {
    %c0_i32 = arith.constant 0 : i32
    %c0_i32_0 = arith.constant 0 : i32
    %c0_i32_1 = arith.constant 0 : i32
    return %c0_i32, %c0_i32_0 : i32, i32
  }
  func.func @transform_2(%arg0: i32) -> (i32, i32) {
    %c0_i32 = arith.constant 0 : i32
    %c0_i32_0 = arith.constant 0 : i32
    %c0_i32_1 = arith.constant 0 : i32
    return %c0_i32, %c0_i32_0 : i32, i32
  }
  func.func @transform_3(%arg0: i32) -> (i32, i32) {
    %c0_i32 = arith.constant 0 : i32
    %c0_i32_0 = arith.constant 0 : i32
    %c0_i32_1 = arith.constant 0 : i32
    return %c0_i32, %c0_i32_0 : i32, i32
  }
  func.func @transform_4(%arg0: i32) -> (i32, i32) {
    %c0_i32 = arith.constant 0 : i32
    %c0_i32_0 = arith.constant 0 : i32
    %c0_i32_1 = arith.constant 0 : i32
    return %c0_i32, %c0_i32_0 : i32, i32
  }
  func.func @transform_5(%arg0: i32) -> (i32, i32) {
    %c0_i32 = arith.constant 0 : i32
    %c0_i32_0 = arith.constant 0 : i32
    return %arg0, %c0_i32 : i32, i32
  }
}

</mosaic_0001>

<bundles_post_ra>
// kernel: tpu_custom_call.1
= control target key start
LH: loop header
LB: loop body
LE: loop exit
PB: predicated region body
PF: predicated region fallthrough
CT: control target
= control target key end

     0   :  { %v311_v0 = vmov 0.0   ;;  %vm312_vm0 = vmmov 0   ;;  %vm47_vm1 = vcmask 261120   ;;  %vm207_vm2 = vcmask 64512   ;;  %s397_s1 = inlined_call_operand.vmem [shape: bf16[32,128], index: 1, kind: input, shape index: {}]   ;;  %s398_s0 = inlined_call_operand.vmem [shape: f32[16,32], index: 0, kind: input, shape index: {}]   ;;  %s399_s3 = inlined_call_operand.vmem [shape: bf16[128,8], index: 3, kind: input, shape index: {}]   ;;  %s400_s2 = inlined_call_operand.vmem [shape: f32[1,128], index: 2, kind: input, shape index: {}]   ;;  %s401_s4 = inlined_call_operand.vmem [shape: f32[1,8], index: 4, kind: input, shape index: {}]   ;;  %s402_s5 = inlined_call_operand.vmem [shape: f32[16,8], index: 5, kind: output, shape index: {}]  }
   0x1   :  { %263 = vmatprep.subr.bf16.mxu0 %v311_v0  ;;  %v293_v1 = vld [vmem:[%s397_s1] sm:$0xff]   ;;  %267 = vmatprep.mubr.msk.bf16.mxu0 %vm312_vm0, %v311_v0  ;;  %v294_v2 = vld [vmem:[%s397_s1 + $0x8] sm:$0xff]   ;;  %v297_v8 = vld [vmem:[%s399_s3 + $0x10] sm:$0xff]  }
   0x2   :  { %271 = vmatprep.subr.bf16.mxu1 %v311_v0  ;;  %287 = vmatprep.mubr.msk.bf16.mxu1 %vm312_vm0, %v311_v0  ;;  %v21_v3 = vld [vmem:[%s398_s0] sm:$0xff]  ;;  %v22_v4 = vld [vmem:[%s398_s0 + $0x8] sm:$0xff]  ;;  %v298_v9 = vld [vmem:[%s399_s3 + $0x18] sm:$0xff]  }
   0x3   :  { %264 = vmatpush3.bf16.msra.mxu0 %v293_v1  ;;  %v295_v5 = vld [vmem:[%s399_s3] sm:$0xff]   ;;  %v23_v6 = vpack.c.bf16 %v22_v4, %v21_v3  ;;  %v296_v7 = vld [vmem:[%s399_s3 + $0x8] sm:$0xff]   ;;  %v301_v12 = vld [vmem:[%s399_s3 + $0x30] sm:$0xff]  }
   0x4   :  { %265 = vmatprep.subr.bf16.mxu0 %v311_v0  ;;  %272 = vmatpush3.bf16.msra.mxu1 %v295_v5  ;;  %v299_v10 = vld [vmem:[%s399_s3 + $0x20] sm:$0xff]   ;;  %v300_v11 = vld [vmem:[%s399_s3 + $0x28] sm:$0xff]   ;;  %v302_v13 = vld [vmem:[%s399_s3 + $0x38] sm:$0xff]  }
   0x5   :  { %273 = vmatprep.subr.bf16.mxu1 %v311_v0  ;;  %v238_v14 = vld [vmem:[%s400_s2] ss:$0 sm:$0xff] }
   0x6   :  { %v242_v24 = vld [vmem:[%s401_s4] ss:$0 sm:$0xff] }
   0x7   :  { %266 = vmatpush3.bf16.msra.mxu0 %v294_v2 }
   0x8   :  { %274 = vmatpush3.bf16.msra.mxu1 %v296_v7 }
   0x9   :  { %275 = vmatprep.subr.bf16.mxu1 %v311_v0 }
   0xa   :  { %268 = vmatmul.mubr.msk.bf16.vlgmr.msra.gmra.mrb[0].mxu0 %vm47_vm1, %v23_v6 }
   0xc   :  { %276 = vmatpush3.bf16.msra.mxu1 %v297_v8 }
   0xd   :  { %277 = vmatprep.subr.bf16.mxu1 %v311_v0 }
  0x10   :  { %278 = vmatpush3.bf16.msra.mxu1 %v298_v9 }
  0x11   :  { %279 = vmatprep.subr.bf16.mxu1 %v311_v0 }
  0x14   :  { %280 = vmatpush3.bf16.msra.mxu1 %v299_v10 }
  0x15   :  { %281 = vmatprep.subr.bf16.mxu1 %v311_v0 }
  0x18   :  { %282 = vmatpush3.bf16.msra.mxu1 %v300_v11 }
  0x19   :  { %283 = vmatprep.subr.bf16.mxu1 %v311_v0 }
  0x1c   :  { %284 = vmatpush3.bf16.msra.mxu1 %v301_v12 }
  0x1d   :  { %285 = vmatprep.subr.bf16.mxu1 %v311_v0 }
  0x20   :  { %286 = vmatpush3.bf16.msra.mxu1 %v302_v13 }
  0xdd   :  { %v85_v15 = vpop.f32.mrb[0].mxu0 }
  0xde   :  { %v86_v16 = vadd.f32 %v238_v14, %v85_v15  ;;  %v269_v17 = vpop.f32.mrb[1].mxu0 }
  0xdf   :  { %v88_v18 = vpop.f32.mrb[2].mxu0 }
  0xe0   :  { %v89_v19 = vadd.f32 %v238_v14, %v88_v18  ;;  %v270_v20 = vpop.f32.mrb[3].mxu0  ;;  %v92_v21 = vmax.f32 %v86_v16, 0.0 }
  0xe2   :  { %v93_v22 = vmax.f32 %v89_v19, 0.0 }
  0xe4   :  { %v94_v23 = vpack.c.bf16 %v93_v22, %v92_v21 }
  0xe6   :  { %288 = vmatmul.mubr.bf16.vlgmr.msra.gmra.mrb[0].mxu1 %v94_v23 }
 0x1b9   :  { %v200_v25 = vpop.f32.mrb[0].mxu1 }
 0x1ba   :  { %v201_v26 = vadd.f32 %v242_v24, %v200_v25  ;;  %v289_v27 = vpop.f32.mrb[1].mxu1 }
 0x1bb   :  { %v203_v28 = vpop.f32.mrb[2].mxu1 }
 0x1bc   :  { %v204_v29 = vadd.f32 %v242_v24, %v203_v28  ;;  %v290_v30 = vpop.f32.mrb[3].mxu1  ;;  %v208_v31 = vsel %vm207_vm2, %v201_v26, -inf }
 0x1bd   :  { %209 = vmax.xlane.f32.xlu0 %v208_v31 }
 0x1be   :  { %v211_v32 = vsel %vm207_vm2, %v204_v29, -inf }
 0x1c1   :  { %212 = vmax.xlane.f32.xlu0 %v211_v32 }
 0x24a   :  { %v210_v33 = vpop.xlane.xlu0 %209 }
 0x24b   :  { %v214_v34 = vsub.f32 %v201_v26, %v210_v33 }
 0x24d   :  { %v216_v35 = vmul.f32 1.442695, %v214_v34 }
 0x24e   :  { %v213_v36 = vpop.xlane.xlu0 %212 }
 0x24f   :  { %303 = vpow2.f32 %v216_v35  ;;  %v215_v37 = vsub.f32 %v204_v29, %v213_v36 }
 0x251   :  { %v218_v38 = vmul.f32 1.442695, %v215_v37 }
 0x253   :  { %305 = vpow2.f32 %v218_v38 }
 0x259   :  { %v304_v39 = vpop.eup %303 }
 0x25a   :  { %v220_v40 = vsel %vm207_vm2, %v304_v39, 0.0 }
 0x25b   :  { %221 = vadd.xlane.f32.xlu1 %v220_v40 }
 0x25d   :  { %v306_v41 = vpop.eup %305 }
 0x25e   :  { %v223_v42 = vsel %vm207_vm2, %v306_v41, 0.0 }
 0x25f   :  { %224 = vadd.xlane.f32.xlu1 %v223_v42 }
 0x2e8   :  { %v222_v43 = vpop.xlane.xlu1 %221 }
 0x2e9   :  { %307 = vrcp.f32 %v222_v43 }
 0x2ec   :  { %v225_v44 = vpop.xlane.xlu1 %224 }
 0x2ed   :  { %309 = vrcp.f32 %v225_v44 }
 0x2f3   :  { %v308_v45 = vpop.eup %307 }
 0x2f4   :  { %v230_v46 = vmul.f32 %v308_v45, %v304_v39 }
 0x2f6   :  { %232 = vst.msk [vmem:[%s402_s5] sm:$0xff] %vm207_vm2, %v230_v46 }
 0x2f7   :  { %v310_v47 = vpop.eup %309 }
 0x2f8   :  { %v231_v48 = vmul.f32 %v310_v47, %v306_v41 }
 0x2fa   :  { %233 = vst.msk [vmem:[%s402_s5 + $0x8] sm:$0xff] %vm207_vm2, %v231_v48 }

</bundles_post_ra>
